<compile_context>
chip_gen: v6e
topology: v6e:2x2x1
jax: 0.10.0
libtpu: 0.0.40
codegen_flags: <defaults>
</compile_context>

<pallas_src>
import functools

import jax
import jax.numpy as jnp
from jax.experimental import pallas as pl
from jax.experimental.pallas import tpu as pltpu


def _matmul_bf16(img_ref, txt_ref, w0i_ref, w0t_ref):
    """cat([img, txt]) @ W0.T == img @ W0i + txt @ W0t (concat never built).
    f32 tiles are cast to bf16 on the VPU right before the MXU dots."""
    return (jnp.dot(img_ref[...].astype(jnp.bfloat16), w0i_ref[...],
                    preferred_element_type=jnp.float32)
            + jnp.dot(txt_ref[...].astype(jnp.bfloat16), w0t_ref[...],
                      preferred_element_type=jnp.float32))


# ----------------------------------------------------------------------------
# Pass 1: bf16 MXU matmuls + per-tile BN partial sums (no h written to HBM).
# ----------------------------------------------------------------------------
def _stats_kernel(img_ref, txt_ref, w0i_ref, w0t_ref, stats_ref):
    """Per batch tile:
         img_ref, txt_ref : [TB, D] f32
         w0i_ref, w0t_ref : [D, D]  bf16 (W0.T split in two, resident)
         stats_ref        : [1, 2, D] f32  -> row 0: sum_b h, row 1: sum_b h^2
    No b0: exactly cancelled by the BN mean subtraction (training mode)."""
    h = _matmul_bf16(img_ref, txt_ref, w0i_ref, w0t_ref)
    psum = jnp.sum(h, axis=0, keepdims=True)          # [1, D]
    psumsq = jnp.sum(h * h, axis=0, keepdims=True)    # [1, D]
    stats_ref[0] = jnp.concatenate([psum, psumsq], axis=0)   # [2, D]


# ----------------------------------------------------------------------------
# Pass 2: recompute matmuls + in-kernel stats combine + folded BN + ReLU
#         + D->1 head (VPU mul + lane reduce) + sigmoid.
# ----------------------------------------------------------------------------
def _bn_head_kernel(img_ref, txt_ref, w0i_ref, w0t_ref, stats_ref, pfp_ref,
                    b1_ref, out_ref, *, inv_n):
    """Per batch tile:
         img_ref, txt_ref : [TB, D] f32
         w0i_ref, w0t_ref : [D, D]  bf16 (resident)
         stats_ref        : [nt, 2, D] f32  all-tile BN partials (resident)
         pfp_ref          : [3, D]  f32  rows = (gamma, beta, w1)
         b1_ref           : [1]     f32  in SMEM
         out_ref          : [TB, 1] f32  sigmoid weight
    inv_n = 1 / real_batch (excludes zero-padded rows)."""
    h = _matmul_bf16(img_ref, txt_ref, w0i_ref, w0t_ref)

    # Combine per-tile partials over the full batch (tiny [2, D] reduce).
    stats = jnp.sum(stats_ref[...], axis=0)                       # [2, D]
    mean = stats[0:1, :] * inv_n                                   # [1, D]
    var = jnp.maximum(stats[1:2, :] * inv_n - mean * mean, 0.0)    # [1, D]

    gamma = pfp_ref[0:1, :]
    beta = pfp_ref[1:2, :]
    w1 = pfp_ref[2:3, :]
    scale = gamma * jax.lax.rsqrt(var + jnp.float32(1e-5))         # folded BN
    shift = beta - mean * scale

    hn = jnp.maximum(h * scale + shift, 0.0)                       # BN + ReLU
    logit = jnp.sum(hn * w1, axis=-1, keepdims=True) + b1_ref[0]   # D -> 1 head
    out_ref[...] = jax.nn.sigmoid(logit).astype(out_ref.dtype)


def _pick_batch_tile(B):
    """Megacore/pipeline-aware batch tile.
       * Aim for >= 8 grid steps so v7x's two TensorCores each get >= 4 steps
         and the HBM<->VMEM pipeline actually multi-buffers.
       * Within that, take the largest tile (<= 1024 rows) to amortize the
         ~0.35 us/step overhead (streaming passes on v5e/v6e benefit most).
       * Tiles are tiny vs VMEM (1024 x 384 f32 ~ 1.5 MiB), so VMEM never binds."""
    for cand in (1024, 512, 256, 128, 64):
        if B >= 8 * cand:
            return cand
    for cand in (128, 64, 32, 16, 8):
        if B >= 2 * cand:
            return cand
    return 8


def weightcalc_forward(image_input, text_input, params, *, tb=None):
    """Full forward pass: two batch-tiled pallas_calls (BN needs full-batch
    statistics); nothing bigger than the (nt, 2, D) partials crosses HBM in
    between."""
    B, D = image_input.shape
    w0i, w0t, b0, gamma, beta, w1_row, b1 = params
    del b0   # exactly cancelled by training-mode BatchNorm (mean subtraction)

    if tb is None:
        tb = _pick_batch_tile(B)
    assert tb % 8 == 0, "batch tile must be a multiple of 8 (sublane)"

    # Zero-pad ragged batches: padded rows give h == 0 (no bias), so they
    # contribute exactly 0 to the BN partials; we divide by the REAL B.
    bp = tb * ((B + tb - 1) // tb)
    if bp != B:
        pad = bp - B
        image_input = jnp.pad(image_input, ((0, pad), (0, 0)))
        text_input = jnp.pad(text_input, ((0, pad), (0, 0)))
    nt = bp // tb

    # Only the tiny [D, D] weights are cast in the wrapper; the big [B, D]
    # inputs stay f32 and are cast to bf16 inside the kernels (halves their
    # HBM traffic vs. materializing bf16 copies).
    w0i_bf = w0i.astype(jnp.bfloat16)
    w0t_bf = w0t.astype(jnp.bfloat16)
    pfp = jnp.concatenate([gamma, beta, w1_row], axis=0).astype(jnp.float32)  # [3, D]
    b1_s = jnp.reshape(b1, (1,)).astype(jnp.float32)                          # SMEM scalar

    cp = pltpu.CompilerParams(dimension_semantics=("parallel",),
                              vmem_limit_bytes=32 * 1024 * 1024)

    # ---- pass 1: matmuls + per-tile BN partials ------------------------------
    stats = pl.pallas_call(
        _stats_kernel,
        grid=(nt,),
        in_specs=[
            pl.BlockSpec((tb, D), lambda i: (i, 0)),   # image tile (f32)
            pl.BlockSpec((tb, D), lambda i: (i, 0)),   # text tile  (f32)
            pl.BlockSpec((D, D), lambda i: (0, 0)),    # W0 image half (resident)
            pl.BlockSpec((D, D), lambda i: (0, 0)),    # W0 text half  (resident)
        ],
        out_specs=pl.BlockSpec((1, 2, D), lambda i: (i, 0, 0)),
        out_shape=jax.ShapeDtypeStruct((nt, 2, D), jnp.float32),
        compiler_params=cp,
    )(image_input, text_input, w0i_bf, w0t_bf)

    # ---- pass 2: recompute + BN (stats combined in-kernel) + head ------------
    out = pl.pallas_call(
        functools.partial(_bn_head_kernel, inv_n=1.0 / float(B)),
        grid=(nt,),
        in_specs=[
            pl.BlockSpec((tb, D), lambda i: (i, 0),
                         pipeline_mode=pl.Buffered(3)),    # image tile (streaming)
            pl.BlockSpec((tb, D), lambda i: (i, 0),
                         pipeline_mode=pl.Buffered(3)),    # text tile  (streaming)
            pl.BlockSpec((D, D), lambda i: (0, 0)),        # W0 image half (resident)
            pl.BlockSpec((D, D), lambda i: (0, 0)),        # W0 text half  (resident)
            pl.BlockSpec((nt, 2, D), lambda i: (0, 0, 0)), # BN partials (resident)
            pl.BlockSpec((3, D), lambda i: (0, 0)),        # gamma / beta / w1 packed
            pl.BlockSpec(memory_space=pltpu.MemorySpace.SMEM),  # b1 scalar
        ],
        out_specs=pl.BlockSpec((tb, 1), lambda i: (i, 0)),
        out_shape=jax.ShapeDtypeStruct((bp, 1), jnp.float32),
        compiler_params=cp,
    )(image_input, text_input, w0i_bf, w0t_bf, stats, pfp, b1_s)

    return out[:B]


def init_params(key, input_dim):
    """Parameter init mimicking PyTorch defaults (uniform fan-in)."""
    D = input_dim
    k0, k1, k2, k3 = jax.random.split(key, 4)

    # layer0: Linear(2D -> D).  PyTorch weight [D, 2D]; stored transposed
    # [2D, D] and split into the image half and the text half.
    bound0 = 1.0 / jnp.sqrt(2.0 * D)
    w0_t = jax.random.uniform(k0, (2 * D, D), jnp.float32, -bound0, bound0)
    b0 = jax.random.uniform(k1, (1, D), jnp.float32, -bound0, bound0)
    w0_img, w0_txt = w0_t[:D, :], w0_t[D:, :]

    # BatchNorm1d(D): gamma=1, beta=0 (PyTorch default init).
    gamma = jnp.ones((1, D), jnp.float32)
    beta = jnp.zeros((1, D), jnp.float32)

    # layer1: Linear(D -> 1).  Stored as a [1, D] ROW so the head is a VPU
    # multiply + lane reduction (no N=1 MXU matmul, no padded [D, 1] tile).
    bound1 = 1.0 / jnp.sqrt(float(D))
    w1_row = jax.random.uniform(k2, (1, D), jnp.float32, -bound1, bound1)
    b1 = jax.random.uniform(k3, (1, 1), jnp.float32, -bound1, bound1)

    return (w0_img, w0_txt, b0, gamma, beta, w1_row, b1)


def reference_forward(image_input, text_input, params):
    """Pure-JAX reference with faithful module math (b0 included, two-pass
    variance).  Matmul operands are cast to bf16 to mirror the kernel's
    deliberate mixed-precision choice; everything else is f32."""
    w0i, w0t, b0, gamma, beta, w1_row, b1 = params
    h = (jnp.dot(image_input.astype(jnp.bfloat16), w0i.astype(jnp.bfloat16),
                 preferred_element_type=jnp.float32)
         + jnp.dot(text_input.astype(jnp.bfloat16), w0t.astype(jnp.bfloat16),
                   preferred_element_type=jnp.float32)
         + b0)
    mean = jnp.mean(h, axis=0, keepdims=True)
    var = jnp.mean((h - mean) ** 2, axis=0, keepdims=True)
    h = (h - mean) * jax.lax.rsqrt(var + 1e-5) * gamma + beta
    h = jnp.maximum(h, 0.0)
    logit = h @ w1_row.T + b1
    return jax.nn.sigmoid(logit)


if __name__ == "__main__":
    B = 512        # batch: tb=64 -> 8 grid steps (exercises tiling + stats combine)
    D = 128        # input_dim (lane-aligned small analogue of the default 300;
                   # for the prod 300, pre-pad features/weights to 384 on host)

    key = jax.random.PRNGKey(0)
    k_img, k_txt, k_par = jax.random.split(key, 3)

    image_input = jax.random.normal(k_img, (B, D), jnp.float32)
    text_input = jax.random.normal(k_txt, (B, D), jnp.float32)
    params = init_params(k_par, D)

    out = weightcalc_forward(image_input, text_input, params)
    out = jax.block_until_ready(out)

    ref = reference_forward(image_input, text_input, params)
    assert out.shape == (B, 1)
    # Differences vs the faithful reference come only from the (exact-in-math)
    # b0 fold, the single-pass variance form and reduction order: O(1e-4).
    err = float(jnp.max(jnp.abs(out - ref)))
    assert err < 1e-3, f"mismatch vs JAX reference: max abs err = {err}"

    print("KERNEL_OK")
</pallas_src>

<mosaic_0001>
module attributes {stable_mosaic.version = 11 : i64} {
  func.func @_stats_kernel(%arg0: i32, %arg1: memref<64x128xf32, #tpu.memory_space<vmem>>, %arg2: memref<64x128xf32, #tpu.memory_space<vmem>>, %arg3: memref<128x128xbf16, #tpu.memory_space<vmem>>, %arg4: memref<128x128xbf16, #tpu.memory_space<vmem>>, %arg5: memref<1x2x128xf32, #tpu.memory_space<vmem>>) attributes {dimension_semantics = [#tpu.dimension_semantics<parallel>], iteration_bounds = array<i64: 8>, scalar_prefetch = 0 : i64, scratch_operands = 0 : i64, tpu.core_type = #tpu.core_type<tc>, window_params = [{transform_indices = @transform_0, window_bounds = array<i64: 64, 128>}, {transform_indices = @transform_1, window_bounds = array<i64: 64, 128>}, {pipeline_mode = #tpu.pipeline_mode<synchronous>, transform_indices = @transform_2, window_bounds = array<i64: 128, 128>}, {pipeline_mode = #tpu.pipeline_mode<synchronous>, transform_indices = @transform_3, window_bounds = array<i64: 128, 128>}, {transform_indices = @transform_4, window_bounds = array<i64: 1, 2, 128>}]} {
    %c0 = arith.constant 0 : index
    %c0_0 = arith.constant 0 : index
    %0 = vector.load %arg1[%c0, %c0_0] : memref<64x128xf32, #tpu.memory_space<vmem>>, vector<64x128xf32>
    %1 = arith.truncf %0 : vector<64x128xf32> to vector<64x128xbf16>
    %c0_1 = arith.constant 0 : index
    %c0_2 = arith.constant 0 : index
    %2 = vector.load %arg3[%c0_1, %c0_2] : memref<128x128xbf16, #tpu.memory_space<vmem>>, vector<128x128xbf16>
    %cst = arith.constant dense<0.000000e+00> : vector<64x128xf32>
    %3 = tpu.matmul %1, %2, %cst {dimension_numbers = #tpu.dot_dimension_numbers<[1], [0], [0], [1], [0, 0, 1, 1], [], []>} : vector<64x128xbf16>, vector<128x128xbf16>, vector<64x128xf32> -> vector<64x128xf32>
    %c0_3 = arith.constant 0 : index
    %c0_4 = arith.constant 0 : index
    %4 = vector.load %arg2[%c0_3, %c0_4] : memref<64x128xf32, #tpu.memory_space<vmem>>, vector<64x128xf32>
    %5 = arith.truncf %4 : vector<64x128xf32> to vector<64x128xbf16>
    %c0_5 = arith.constant 0 : index
    %c0_6 = arith.constant 0 : index
    %6 = vector.load %arg4[%c0_5, %c0_6] : memref<128x128xbf16, #tpu.memory_space<vmem>>, vector<128x128xbf16>
    %cst_7 = arith.constant dense<0.000000e+00> : vector<64x128xf32>
    %7 = tpu.matmul %5, %6, %cst_7 {dimension_numbers = #tpu.dot_dimension_numbers<[1], [0], [0], [1], [0, 0, 1, 1], [], []>} : vector<64x128xbf16>, vector<128x128xbf16>, vector<64x128xf32> -> vector<64x128xf32>
    %8 = arith.addf %3, %7 : vector<64x128xf32>
    %cst_8 = arith.constant dense<0.000000e+00> : vector<128xf32>
    %9 = vector.multi_reduction <add>, %8, %cst_8 [0] : vector<64x128xf32> to vector<128xf32>
    %10 = vector.shape_cast %9 : vector<128xf32> to vector<1x128xf32>
    %11 = arith.mulf %8, %8 : vector<64x128xf32>
    %cst_9 = arith.constant dense<0.000000e+00> : vector<128xf32>
    %12 = vector.multi_reduction <add>, %11, %cst_9 [0] : vector<64x128xf32> to vector<128xf32>
    %13 = vector.shape_cast %12 : vector<128xf32> to vector<1x128xf32>
    %14 = tpu.concatenate %10, %13 in 0 : vector<1x128xf32>, vector<1x128xf32> -> vector<2x128xf32>
    %c0_10 = arith.constant 0 : index
    %c0_11 = arith.constant 0 : index
    %c0_12 = arith.constant 0 : index
    %15 = vector.load %arg5[%c0_10, %c0_11, %c0_12] : memref<1x2x128xf32, #tpu.memory_space<vmem>>, vector<1x2x128xf32>
    %16 = vector.shape_cast %15 : vector<1x2x128xf32> to vector<2x128xf32>
    %17 = vector.shape_cast %14 : vector<2x128xf32> to vector<1x2x128xf32>
    tpu.vector_store %arg5[%c0_10, %c0_11, %c0_12], %17 {strides = array<i32>} : memref<1x2x128xf32, #tpu.memory_space<vmem>>, vector<1x2x128xf32>,
    return
  }
  func.func @transform_0(%arg0: i32) -> (i32, i32) {
    %c0_i32 = arith.constant 0 : i32
    %c0_i32_0 = arith.constant 0 : i32
    return %arg0, %c0_i32 : i32, i32
  }
  func.func @transform_1(%arg0: i32) -> (i32, i32) {
    %c0_i32 = arith.constant 0 : i32
    %c0_i32_0 = arith.constant 0 : i32
    return %arg0, %c0_i32 : i32, i32
  }
  func.func @transform_2(%arg0: i32) -> (i32, i32) {
    %c0_i32 = arith.constant 0 : i32
    %c0_i32_0 = arith.constant 0 : i32
    %c0_i32_1 = arith.constant 0 : i32
    return %c0_i32, %c0_i32_0 : i32, i32
  }
  func.func @transform_3(%arg0: i32) -> (i32, i32) {
    %c0_i32 = arith.constant 0 : i32
    %c0_i32_0 = arith.constant 0 : i32
    %c0_i32_1 = arith.constant 0 : i32
    return %c0_i32, %c0_i32_0 : i32, i32
  }
  func.func @transform_4(%arg0: i32) -> (i32, i32, i32) {
    %c0_i32 = arith.constant 0 : i32
    %c0_i32_0 = arith.constant 0 : i32
    %c0_i32_1 = arith.constant 0 : i32
    return %arg0, %c0_i32, %c0_i32_0 : i32, i32, i32
  }
}

</mosaic_0001>

<bundles_post_ra>
// kernel: tpu_custom_call.1
= control target key start
LH: loop header
LB: loop body
LE: loop exit
PB: predicated region body
PF: predicated region fallthrough
CT: control target
= control target key end

     0   :  { %s1414_s0 = inlined_call_operand.hbm [shape: f32[512,128], index: 0, kind: input, shape index: {}]   ;;  %s1415_s1 = inlined_call_operand.hbm [shape: f32[512,128], index: 1, kind: input, shape index: {}]   ;;  %s1416_s2 = inlined_call_operand.hbm [shape: bf16[128,128], index: 2, kind: input, shape index: {}]   ;;  %s1417_s3 = inlined_call_operand.hbm [shape: bf16[128,128], index: 3, kind: input, shape index: {}]   ;;  %s1418_s4 = inlined_call_operand.hbm [shape: f32[8,2,128], index: 4, kind: output, shape index: {}]  }
   0x1   :  { %1422 = sst [smem:[#allocation16_spill]] %s1414_s0 }
   0x2   :  { %9 = vsyncpa [#allocation3], 0 }
   0x3   :  { %11 = vsyncpa [#allocation3 + $0x1], 0 }
   0x4   :  { %12 = vsyncpa [#allocation6], 0 }
   0x5   :  { %14 = vsyncpa [#allocation6 + $0x1], 0 }
   0x6   :  { %15 = vsyncpa [#allocation9], 0 }
   0x7   :  { %16 = vsyncpa [#allocation4], 0 }
   0x8   :  { %18 = vsyncpa [#allocation4 + $0x1], 0  ;;  %s1156_s15 = smov 0   ;;  %s1158_s16 = smov 0  }
   0x9   :  { %s1160_s17 = smov 0   ;;  %s1162_s18 = smov 0  }
   0xa LB: > { %s1177_s19 = sadd.s32 4294967295, %s1120_s18   ;;  %s733_s20 = sadd.s32 4294967294, %s1120_s18   ;;  %s1120_s18 = sphi %s1162_s18, %s1441_s18   ;;  %s1116_s17 = sphi %s1160_s17, %s1440_s17   ;;  %s1112_s16 = sphi %s1158_s16, %s1439_s16   ;;  %s1108_s15 = sphi %s1156_s15, %s1438_s15  }
   0xb   : > { %p44_p0 = scmp.ne.s32.totalorder %s1112_s16, %s1108_s15  ;;  %p1419_p1 = scmp.eq.s32.totalorder %s1177_s19, 0 }
   0xc   : > { %p142_p3 = scmp.eq.s32.totalorder %s733_s20, 7  ;;  %p734_p5 = scmp.ge.s32.totalorder %s1120_s18, 1 }
   0xd   : > { %p1186_p4 = por %p1419_p1, %p44_p0  ;;  %p149_p7 = scmp.lt.s32.totalorder %s1120_s18, 9 }
   0xe   : > { %p1191_p6 = por %p142_p3, %p44_p0  ;;  %s1122_s24 = smov [#allocation7]  }
   0xf   : > { %s1423_s21 = scalar_select %p1186_p4, 1, 0 }
  0x10   : > { %s1424_s22 = scalar_select %p1191_p6, 1, 0 }
  0x11   : > { %p1196_p8 = pnand %p734_p5, %p149_p7  ;;  %s161_s25 = sshll.u32 %s1122_s24, 4  ;;  %s162_s25 = int_to_ptr.vmem [resolvable:$true] %s161_s25 }
  0x12   : > { %s1123_s27 = smov [#allocation8]   ;;  %s947_s29 = scalar_lea.vmem %s162_s25, 1024 }
  0x13   : > { %p858_p9 = pneg %p1196_p8  ;;  %s174_s28 = sshll.u32 %s1123_s27, 4  ;;  %s175_s28 = int_to_ptr.vmem [resolvable:$true] %s174_s28 }
  0x14   : > { %p948_p12 = scmp.ne.s32.totalorder %s162_s25, %s947_s29  ;;  %p955_p3 = scmp.lt.s32.totalorder %s162_s25, %s162_s25 }
  0x15   : > { %p1204_p10 = pnand %p858_p9, %p1419_p1  ;;  %p956_p5 = scmp.lt.s32.totalorder %s947_s29, %s947_s29 }
  0x17   : > { %p938_p11 = pneg %p1204_p10  ;;  %p957_p7 = por %p956_p5, %p955_p3 }
  0x19   : > { %p950_p13 = pnand %p948_p12, %p938_p11 }
  0x1b   : > { %p951_p0 = pneg %p950_p13 }
  0x1d   : > { %p958_p9 = pnand %p957_p7, %p951_p0 }
  0x1f   : > { %961 = shalt.err (!%p958_p9)
}
  0x20   : > { %s1124_s30 = smov 64   ;;  %s1125_s5 = smov 4  }
  0x21   : > { %861 = dma.hbm_to_vmem [thread:$0]  (!%p1204_p10), %s1416_s2, 1024, %s162_s25, [#allocation6], %s1124_s30, %s1124_s30, %s1125_s5  }
  0x22   : > { %s973_s8 = scalar_lea.vmem %s175_s28, 1024  ;;  %p981_p2 = scmp.lt.s32.totalorder %s175_s28, %s175_s28 }
  0x23   : > { %p974_p1 = scmp.ne.s32.totalorder %s175_s28, %s973_s8  ;;  %p982_p6 = scmp.lt.s32.totalorder %s973_s8, %s973_s8 }
  0x25   : > { %p976_p12 = pnand %p974_p1, %p938_p11  ;;  %p983_p3 = por %p982_p6, %p981_p2 }
  0x27   : > { %p977_p13 = pneg %p976_p12 }
  0x29   : > { %p984_p0 = pnand %p983_p3, %p977_p13 }
  0x2b   : > { %987 = shalt.err (!%p984_p0)
}
  0x2c   : > { %864 = dma.hbm_to_vmem [thread:$0]  (!%p1204_p10), %s1417_s3, 1024, %s175_s28, [#allocation9], %s1124_s30, %s1124_s30, %s1125_s5  }
  0x2d   : > { %s1227_s11 = sadd.s32 1, %s1120_s18   ;;  %s31_s12 = sadd.s32 1, %s1116_s17 }
  0x2e   : > { %s28_s13 = ssub.s32 %s1120_s18, %s1227_s11  ;;  %p38_p1 = scmp.ne.s32.totalorder %s1116_s17, %s1112_s16 }
  0x2f   : > { %p29_p2 = scmp.eq.s32.totalorder %s28_s13, 0  ;;  %p39_p6 = scmp.eq.s32.totalorder %s1120_s18, 0 }
  0x30   : > { %p1427_p11 = scmp.eq.s32.totalorder %s1177_s19, 7  ;;  %p878_p7 = scmp.lt.s32.totalorder %s1120_s18, 8 }
  0x31   : > { %s1243_s20 = scalar_select %p29_p2, %s1116_s17, %s31_s12  }
  0x32   : > { %p1237_p5 = por %p1427_p11, %p38_p1  ;;  %p40_p9 = por %p39_p6, %p38_p1 }
  0x33   : > { %s188_s24 = sand.u32 1, %s1116_s17   ;;  %s770_s26 = sshll.u32 %s1120_s18, 10 }
  0x34   : > { %s1428_s14 = scalar_select %p1237_p5, 1, 0 }
  0x35   : > { %s1246_s25 = sshll.u32 %s188_s24, 6  ;;  %s1429_s0 = sld [smem:[#allocation16_spill]] }
  0x36   : > { %s192_s30 = scalar_lea.vmem [#allocation2], %s1246_s25  ;;  %p1259_p10 = pnand %p878_p7, %p40_p9 }
  0x37   : > { %s199_s5 = sshll.u32 %s192_s30, 4  ;;  %s1263_s7 = scalar_lea.sflag [#allocation3], %s188_s24  ;;  %s1257_s5 = int_to_ptr.vmem [resolvable:$true] %s199_s5 }
  0x38   : > { %p990_p13 = pneg %p1259_p10 }
  0x3b   : > { %s1254_s29 = scalar_lea.hbm %s1429_s0, %s770_s26  ;;  %s993_s12 = scalar_lea.hbm %s1429_s0, 8192 }
  0x3c   : > { %s988_s8 = scalar_lea.hbm %s1254_s29, 1024  ;;  %p994_p1 = scmp.lt.s32.totalorder %s1254_s29, %s1429_s0 }
  0x3d   : > { %p989_p12 = scmp.ne.s32.totalorder %s1254_s29, %s988_s8  ;;  %p995_p2 = scmp.lt.s32.totalorder %s993_s12, %s988_s8 }
  0x3f   : > { %p991_p3 = pnand %p990_p13, %p989_p12  ;;  %p996_p6 = por %p995_p2, %p994_p1 }
  0x41   : > { %p992_p0 = pneg %p991_p3 }
  0x43   : > { %p997_p11 = pnand %p996_p6, %p992_p0 }
  0x45   : > { %1000 = shalt.err (!%p997_p11)
}
  0x46   : > { %s1001_s24 = scalar_lea.vmem %s1257_s5, 1024  ;;  %s1126_s28 = smov [#allocation2]  }
  0x47   : > { %p1002_p7 = scmp.ne.s32.totalorder %s1257_s5, %s1001_s24  ;;  %s1006_s30 = sshll.u32 %s1126_s28, 4  ;;  %s1007_s30 = int_to_ptr.vmem [resolvable:$false] %s1006_s30 }
  0x48   : > { %s1008_s9 = scalar_lea.vmem %s1007_s30, 2048  ;;  %p1009_p3 = scmp.lt.s32.totalorder %s1257_s5, %s1007_s30 }
  0x49   : > { %p1004_p9 = pnand %p1002_p7, %p990_p13  ;;  %p1010_p5 = scmp.lt.s32.totalorder %s1008_s9, %s1001_s24 }
  0x4b   : > { %p1005_p12 = pneg %p1004_p9  ;;  %p1011_p4 = por %p1010_p5, %p1009_p3 }
  0x4d   : > { %p1012_p1 = pnand %p1011_p4, %p1005_p12 }
  0x4f   : > { %1015 = shalt.err (!%p1012_p1)
}
  0x50   : > { %s1127_s8 = smov 128   ;;  %s1128_s10 = smov 8  }
  0x51   : > { %868 = dma.hbm_to_vmem [thread:$0]  (!%p1259_p10), %s1254_s29, 1024, %s1257_s5, %s1263_s7, %s1127_s8, %s1127_s8, %s1128_s10  }
  0x52   : > { %s1298_s27 = scalar_lea.hbm %s1415_s1, %s770_s26  ;;  %s213_s24 = scalar_lea.vmem [#allocation5], %s1246_s25 }
  0x53   : > { %s220_s28 = sshll.u32 %s213_s24, 4  ;;  %s209_s30 = sand.u32 1, %s1120_s18   ;;  %s1301_s28 = int_to_ptr.vmem [resolvable:$true] %s220_s28 }
  0x54   : > { %s210_s9 = scalar_lea.sflag [#allocation6], %s209_s30  ;;  %s1016_s0 = scalar_lea.hbm %s1298_s27, 1024 }
  0x55   : > { %p1017_p4 = scmp.ne.s32.totalorder %s1298_s27, %s1016_s0  ;;  %s1021_s26 = scalar_lea.hbm %s1415_s1, 8192 }
  0x56   : > { %p1022_p2 = scmp.lt.s32.totalorder %s1298_s27, %s1415_s1  ;;  %p1023_p6 = scmp.lt.s32.totalorder %s1021_s26, %s1016_s0 }
  0x57   : > { %p1019_p5 = pnand %p1017_p4, %p990_p13 }
  0x58   : > { %p1024_p11 = por %p1023_p6, %p1022_p2 }
  0x59   : > { %p1020_p0 = pneg %p1019_p5 }
  0x5b   : > { %p1025_p7 = pnand %p1024_p11, %p1020_p0 }
  0x5d   : > { %1028 = shalt.err (!%p1025_p7)
}
  0x5e   : > { %s1029_s25 = scalar_lea.vmem %s1301_s28, 1024  ;;  %s1129_s13 = smov [#allocation5]  }
  0x5f   : > { %p1030_p9 = scmp.ne.s32.totalorder %s1301_s28, %s1029_s25  ;;  %s1034_s24 = sshll.u32 %s1129_s13, 4  ;;  %s1035_s24 = int_to_ptr.vmem [resolvable:$false] %s1034_s24 }
  0x60   : > { %s1036_s30 = scalar_lea.vmem %s1035_s24, 2048  ;;  %p1037_p1 = scmp.lt.s32.totalorder %s1301_s28, %s1035_s24 }
  0x61   : > { %p1032_p12 = pnand %p1030_p9, %p990_p13  ;;  %p1038_p4 = scmp.lt.s32.totalorder %s1036_s30, %s1029_s25 }
  0x63   : > { %p1033_p3 = pneg %p1032_p12  ;;  %p1039_p5 = por %p1038_p4, %p1037_p1 }
  0x65   : > { %p1040_p2 = pnand %p1039_p5, %p1033_p3 }
  0x67   : > { %1043 = shalt.err (!%p1040_p2)
}
  0x68   : > { %871 = dma.hbm_to_vmem [thread:$0]  (!%p1259_p10), %s1298_s27, 1024, %s1301_s28, %s210_s9, %s1127_s8, %s1127_s8, %s1128_s10  }
  0x69   : > { %232 = sbr.rel (%p1196_p8) target bundleno = 397 (0x18d), region = 36  ;;  %s1332_s0 = sand.u32 (!%p1196_p8), 1, %s1112_s16  }
  0x6a   : > { %s745_s29 = sshll.u32 (!%p1196_p8), %s1332_s0, 6  ;;  %s235_s5 = scalar_lea.sflag (!%p1196_p8), [#allocation3], %s1332_s0 }
  0x6b   : > { %s1336_s26 = scalar_lea.vmem (!%p1196_p8), [#allocation2], %s745_s29  ;;  %p1431_p13 = scmp.ne.s32.totalorder (!%p1196_p8), %s1423_s21, 0 }
  0x6e   : > { %1087 = dma.done.wait (%p1431_p13), %s235_s5, 1024  }
  0x6f   : > { %1089 = vsyncadd (%p1431_p13), %s235_s5, 4294966272  ;;  %s243_s6 = sand.u32 1, %s1177_s19   ;;  %s1343_s8 = scalar_lea.vmem [#allocation5], %s745_s29 }
  0x70   : > { %s244_s23 = scalar_lea.sflag [#allocation6], %s243_s6 }
  0x71   : > { %1091 = dma.done.wait (%p1431_p13), %s244_s23, 1024  }
  0x72   : > { %1093 = vsyncadd (%p1431_p13), %s244_s23, 4294966272  ;;  %p1432_p8 = scmp.eq.s32.totalorder %s1177_s19, 0 }
  0x74   : > { %1095 = dma.done.wait (%p1432_p8), [#allocation6], 1024   ;;  %p1433_p10 = pmov %p1432_p8 }
  0x75   : > { %p1434_p0 = pmov %p1432_p8 }
  0x76   : > { %1097 = vsyncadd (%p1433_p10), [#allocation6], 4294966272 }
  0x77   : > { %1099 = dma.done.wait (%p1434_p0), [#allocation9], 1024   ;;  %p1435_p6 = pmov %p1434_p0 }
  0x78   : > { %v920_v0 = vld [vmem:[#allocation8 + $0x38] sm:$0xff]   ;;  %v922_v2 = vld [vmem:[#allocation8 + $0x30] sm:$0xff]   ;;  %v924_v4 = vld [vmem:[#allocation8 + $0x28] sm:$0xff]   ;;  %s749_s21 = sshll.u32 %s1332_s0, 1  ;;  %s767_s10 = sshll.u32 %s1177_s19, 5  ;;  %vm604_vm0 = vcmask 1040384  }
  0x79   : > { %1101 = vsyncadd (%p1435_p6), [#allocation9], 4294966272  ;;  %v921_v1 = vld [vmem:[#allocation7 + $0x38] sm:$0xff]   ;;  %796 = vmatprep.subr.bf16.mxu0 %v920_v0  ;;  %v923_v3 = vld [vmem:[#allocation7 + $0x30] sm:$0xff]   ;;  %s284_s27 = scalar_lea.vmem [#allocation10], %s749_s21  ;;  %s1378_s12 = scalar_lea.hbm %s1418_s4, %s767_s10 }
  0x7a   : > { %820 = vmatprep.subr.bf16.mxu1 %v921_v1  ;;  %797 = vmatpush3.bf16.msra.mxu0 %v920_v0  ;;  %v925_v5 = vld [vmem:[#allocation7 + $0x28] sm:$0xff]   ;;  %v926_v6 = vld [vmem:[#allocation8 + $0x20] sm:$0xff]   ;;  %v928_v8 = vld [vmem:[#allocation8 + $0x18] sm:$0xff]   ;;  %s621_s28 = sshll.u32 %s284_s27, 4  ;;  %s608_s25 = scalar_lea.sflag [#allocation4], %s1332_s0  ;;  %s622_s28 = int_to_ptr.vmem [resolvable:$true] %s621_s28 }
  0x7b   : > { %821 = vmatpush3.bf16.msra.mxu1 %v921_v1  ;;  %798 = vmatprep.subr.bf16.mxu0 %v922_v2  ;;  %v927_v7 = vld [vmem:[#allocation7 + $0x20] sm:$0xff]   ;;  %v929_v9 = vld [vmem:[#allocation7 + $0x18] sm:$0xff]   ;;  %v930_v10 = vld [vmem:[#allocation8 + $0x10] sm:$0xff]   ;;  %s1044_s13 = scalar_lea.vmem %s622_s28, 32  ;;  %p1436_p7 = scmp.ne.s32.totalorder %s1428_s14, 0 }
  0x7c   : > { %822 = vmatprep.subr.bf16.mxu1 %v923_v3  ;;  %v316_v11 = vld [vmem:[%s1343_s8] sm:$0xff]  ;;  %v317_v12 = vld [vmem:[%s1343_s8 + $0x8] sm:$0xff]  ;;  %v931_v14 = vld [vmem:[#allocation7 + $0x10] sm:$0xff]   ;;  %p1045_p11 = scmp.ne.s32.totalorder %s622_s28, %s1044_s13  ;;  %s1130_s19 = smov [#allocation10]  }
  0x7d   : > { %v288_v13 = vld [vmem:[%s1336_s26] sm:$0xff]  ;;  %v324_v15 = vpack.c.bf16 %v317_v12, %v316_v11  ;;  %v289_v16 = vld [vmem:[%s1336_s26 + $0x8] sm:$0xff]  ;;  %v318_v22 = vld [vmem:[%s1343_s8 + $0x10] sm:$0xff]  ;;  %s1048_s24 = sshll.u32 %s1130_s19, 4  ;;  %s1049_s24 = int_to_ptr.vmem [resolvable:$false] %s1048_s24 }
  0x7e   : > { %799 = vmatpush3.bf16.msra.mxu0 %v922_v2  ;;  %v296_v17 = vpack.c.bf16 %v289_v16, %v288_v13  ;;  %v932_v18 = vld [vmem:[#allocation8 + $0x8] sm:$0xff]   ;;  %v934_v20 = vld [vmem:[#allocation8] sm:$0xff]   ;;  %v319_v23 = vld [vmem:[%s1343_s8 + $0x18] sm:$0xff]  ;;  %p1046_p9 = pnand %p1045_p11, %p1436_p7  ;;  %s1050_s30 = scalar_lea.vmem %s1049_s24, 64 }
  0x7f   : > { %823 = vmatpush3.bf16.msra.mxu1 %v923_v3  ;;  %800 = vmatprep.subr.bf16.mxu0 %v924_v4  ;;  %v933_v19 = vld [vmem:[#allocation7 + $0x8] sm:$0xff]   ;;  %v935_v21 = vld [vmem:[#allocation7] sm:$0xff]   ;;  %v290_v24 = vld [vmem:[%s1336_s26 + $0x10] sm:$0xff]  ;;  %v325_v30 = vpack.c.bf16 %v319_v23, %v318_v22  ;;  %p1051_p3 = scmp.lt.s32.totalorder %s622_s28, %s1049_s24  ;;  %p1052_p1 = scmp.lt.s32.totalorder %s1050_s30, %s1044_s13 }
  0x80   : > { %824 = vmatprep.subr.bf16.mxu1 %v925_v5  ;;  %812 = vmatprep.mubr.bf16.mxu0 %v324_v15  ;;  %v291_v25 = vld [vmem:[%s1336_s26 + $0x18] sm:$0xff]  ;;  %v320_v26 = vld [vmem:[%s1343_s8 + $0x20] sm:$0xff]  ;;  %v321_v27 = vld [vmem:[%s1343_s8 + $0x28] sm:$0xff]  ;;  %p1047_p12 = pneg %p1046_p9 }
  0x81   : > { %836 = vmatprep.mubr.bf16.mxu1 %v296_v17  ;;  %v292_v28 = vld [vmem:[%s1336_s26 + $0x20] sm:$0xff]  ;;  %v293_v29 = vld [vmem:[%s1336_s26 + $0x28] sm:$0xff]  ;;  %v297_v31 = vpack.c.bf16 %v291_v25, %v290_v24  ;;  %v326_v32 = vpack.c.bf16 %v321_v27, %v320_v26  ;;  %v322_v34 = vld [vmem:[%s1343_s8 + $0x30] sm:$0xff]  ;;  %p1053_p4 = por %p1052_p1, %p1051_p3 }
  0x82   : > { %801 = vmatpush3.bf16.msra.mxu0 %v924_v4  ;;  %v298_v33 = vpack.c.bf16 %v293_v29, %v292_v28  ;;  %v323_v35 = vld [vmem:[%s1343_s8 + $0x38] sm:$0xff]  ;;  %v294_v36 = vld [vmem:[%s1336_s26 + $0x30] sm:$0xff] }
  0x83   : > { %825 = vmatpush3.bf16.msra.mxu1 %v925_v5  ;;  %802 = vmatprep.subr.bf16.mxu0 %v926_v6  ;;  %v295_v37 = vld [vmem:[%s1336_s26 + $0x38] sm:$0xff]  ;;  %v327_v38 = vpack.c.bf16 %v323_v35, %v322_v34  ;;  %p1054_p5 = pnand %p1053_p4, %p1047_p12 }
  0x84   : > { %826 = vmatprep.subr.bf16.mxu1 %v927_v7  ;;  %v299_v39 = vpack.c.bf16 %v295_v37, %v294_v36 }
  0x86   : > { %803 = vmatpush3.bf16.msra.mxu0 %v926_v6 }
  0x87   : > { %827 = vmatpush3.bf16.msra.mxu1 %v927_v7  ;;  %804 = vmatprep.subr.bf16.mxu0 %v928_v8 }
  0x88   : > { %828 = vmatprep.subr.bf16.mxu1 %v929_v9 }
  0x8a   : > { %805 = vmatpush3.bf16.msra.mxu0 %v928_v8 }
  0x8b   : > { %829 = vmatpush3.bf16.msra.mxu1 %v929_v9  ;;  %806 = vmatprep.subr.bf16.mxu0 %v930_v10 }
  0x8c   : > { %830 = vmatprep.subr.bf16.mxu1 %v931_v14 }
  0x8e   : > { %807 = vmatpush3.bf16.msra.mxu0 %v930_v10 }
  0x8f   : > { %831 = vmatpush3.bf16.msra.mxu1 %v931_v14  ;;  %808 = vmatprep.subr.bf16.mxu0 %v932_v18 }
  0x90   : > { %832 = vmatprep.subr.bf16.mxu1 %v933_v19 }
  0x92   : > { %809 = vmatpush3.bf16.msra.mxu0 %v932_v18 }
  0x93   : > { %833 = vmatpush3.bf16.msra.mxu1 %v933_v19  ;;  %810 = vmatprep.subr.bf16.mxu0 %v934_v20 }
  0x94   : > { %834 = vmatprep.subr.bf16.mxu1 %v935_v21 }
  0x96   : > { %811 = vmatpush3.bf16.msra.mxu0 %v934_v20 }
  0x97   : > { %835 = vmatpush3.bf16.msra.mxu1 %v935_v21 }
  0x99   : > { %813 = vmatmul.mubr.bf16.vlgmr.msra.gmra.mxu0 %v325_v30 }
  0x9a   : > { %837 = vmatmul.mubr.bf16.vlgmr.msra.gmra.mxu1 %v297_v31  ;;  %816 = vmatprep.mubr.bf16.mxu0 %v326_v32 }
  0x9b   : > { %840 = vmatprep.mubr.bf16.mxu1 %v298_v33 }
  0xa1   : > { %817 = vmatmul.mubr.bf16.gmra.mxu0 %v327_v38 }
  0xa2   : > { %841 = vmatmul.mubr.bf16.gmra.mxu1 %v299_v39 }
 0x159   : > { %v814_v40 = vpop.f32.mrf.mxu0 }
 0x15a   : > { %v838_v41 = vpop.f32.mrf.mxu1 }
 0x15b   : > { %v426_v42 = vpop.f32.mrf.mxu0  ;;  %v548_v49 = vadd.f32 %v838_v41, %v814_v40 }
 0x15c   : > { %v539_v43 = vpop.f32.mrf.mxu1 }
 0x15d   : > { %v815_v44 = vpop.f32.mrf.mxu0  ;;  %v540_v46 = vadd.f32 %v539_v43, %v426_v42  ;;  %v585_v59 = vmul.f32 %v548_v49, %v548_v49 }
 0x15e   : > { %v839_v45 = vpop.f32.mrf.mxu1 }
 0x15f   : > { %v429_v47 = vpop.f32.mrf.mxu0  ;;  %v583_v53 = vmul.f32 %v540_v46, %v540_v46  ;;  %v551_v54 = vadd.f32 %v839_v45, %v815_v44 }
 0x160   : > { %v542_v48 = vpop.f32.mrf.mxu1 }
 0x161   : > { %v543_v50 = vadd.f32 %v542_v48, %v429_v47  ;;  %v818_v51 = vpop.f32.mrf.mxu0  ;;  %v586_v1 = vmul.f32 %v551_v54, %v551_v54 }
 0x162   : > { %v842_v52 = vpop.f32.mrf.mxu1 }
 0x163   : > { %v570_v55 = vadd.f32 %v543_v50, %v540_v46  ;;  %v584_v56 = vmul.f32 %v543_v50, %v543_v50  ;;  %v442_v57 = vpop.f32.mrf.mxu0  ;;  %v564_v5 = vadd.f32 %v842_v52, %v818_v51 }
 0x164   : > { %v555_v58 = vpop.f32.mrf.mxu1 }
 0x165   : > { %v571_v60 = vadd.f32 %v570_v55, %v548_v49  ;;  %v591_v61 = vadd.f32 %v584_v56, %v583_v53  ;;  %v556_v62 = vadd.f32 %v555_v58, %v442_v57  ;;  %v819_v63 = vpop.f32.mrf.mxu0  ;;  %v589_v15 = vmul.f32 %v564_v5, %v564_v5 }
 0x166   : > { %v843_v0 = vpop.f32.mrf.mxu1 }
 0x167   : > { %v592_v2 = vadd.f32 %v591_v61, %v585_v59  ;;  %v572_v3 = vadd.f32 %v571_v60, %v551_v54  ;;  %v445_v4 = vpop.f32.mrf.mxu0  ;;  %v587_v8 = vmul.f32 %v556_v62, %v556_v62  ;;  %v567_v12 = vadd.f32 %v843_v0, %v819_v63 }
 0x168   : > { %v558_v6 = vpop.f32.mrf.mxu1 }
 0x169   : > { %v573_v7 = vadd.f32 %v572_v3, %v556_v62  ;;  %v593_v9 = vadd.f32 %v592_v2, %v586_v1  ;;  %v559_v10 = vadd.f32 %v558_v6, %v445_v4  ;;  %v590_v18 = vmul.f32 %v567_v12, %v567_v12 }
 0x16b   : > { %v594_v11 = vadd.f32 %v593_v9, %v587_v8  ;;  %v574_v13 = vadd.f32 %v573_v7, %v559_v10  ;;  %v588_v14 = vmul.f32 %v559_v10, %v559_v10 }
 0x16d   : > { %v575_v16 = vadd.f32 %v574_v13, %v564_v5  ;;  %v595_v17 = vadd.f32 %v594_v11, %v588_v14 }
 0x16f   : > { %v576_v19 = vadd.f32 %v575_v16, %v567_v12  ;;  %v596_v20 = vadd.f32 %v595_v17, %v589_v15 }
 0x171   : > { %v577_v21 = vrot.slane %v576_v19, 4  ;;  %v597_v22 = vadd.f32 %v596_v20, %v590_v18 }
 0x173   : > { %v578_v23 = vadd.f32 %v577_v21, %v576_v19  ;;  %v598_v24 = vrot.slane %v597_v22, 4 }
 0x175   : > { %v579_v25 = vrot.slane %v578_v23, 2  ;;  %v599_v26 = vadd.f32 %v598_v24, %v597_v22 }
 0x177   : > { %v580_v27 = vadd.f32 %v579_v25, %v578_v23  ;;  %v600_v28 = vrot.slane %v599_v26, 2 }
 0x179   : > { %v581_v29 = vrot.slane %v580_v27, 1  ;;  %v601_v30 = vadd.f32 %v600_v28, %v599_v26 }
 0x17b   : > { %v602_v31 = vrot.slane %v601_v30, 1  ;;  %v582_v32 = vadd.f32 %v581_v29, %v580_v27 }
 0x17d   : > { %v603_v33 = vadd.f32 %v602_v31, %v601_v30 }
 0x17f   : > { %v605_v34 = vsel %vm604_vm0, %v582_v32, %v603_v33 }
 0x180   : > { %606 = vst [vmem:[%s284_s27] sm:$0x3] %v605_v34 }
 0x181   : > { %1057 = shalt.err (!%p1054_p5)
}
 0x182   : > { %s1058_s29 = scalar_lea.hbm %s1378_s12, 32  ;;  %s1062_s26 = scalar_lea.hbm %s1418_s4, 256 }
 0x183   : > { %p1059_p2 = scmp.ne.s32.totalorder %s1378_s12, %s1058_s29  ;;  %p1063_p10 = scmp.lt.s32.totalorder %s1378_s12, %s1418_s4 }
 0x184   : > { %p1064_p0 = scmp.lt.s32.totalorder %s1062_s26, %s1058_s29 }
 0x185   : > { %p1060_p13 = pnand %p1059_p2, %p1436_p7 }
 0x186   : > { %p1065_p6 = por %p1064_p0, %p1063_p10 }
 0x187   : > { %p1061_p8 = pneg %p1060_p13 }
 0x189   : > { %p1066_p11 = pnand %p1065_p6, %p1061_p8 }
 0x18b   : > { %1069 = shalt.err (!%p1066_p11)
}
 0x18c   : > { %856 = dma.vmem_to_hbm [thread:$0]  (%p1436_p7), %s622_s28, 32, %s1378_s12, %s608_s25  }
 0x18d PF: > { %p881_p9 = scmp.ge.s32.totalorder %s1120_s18, 2  ;;  %s633_s8 = sand.u32 1, %s1108_s15  }
 0x18e   : > { %p1437_p12 = scmp.ne.s32.totalorder %s1424_s22, 0  ;;  %s634_s21 = scalar_lea.sflag [#allocation4], %s633_s8 }
 0x190   : > { %p873_p3 = pnand %p881_p9, %p1437_p12 }
 0x192   : > { %p874_p1 = pneg %p873_p3 }
 0x194   : > { %1103 = dma.done.wait (%p874_p1), %s634_s21, 32  }
 0x195   : > { %1105 = vsyncadd (%p874_p1), %s634_s21, 4294967264  ;;  %p21_p4 = scmp.ge.s32.totalorder %s1227_s11, 10   ;;  %s1438_s15 = smov %s1112_s16 }
 0x196   : > { %s1439_s16 = smov %s1116_s17  ;;  %s1440_s17 = smov %s1243_s20 }
 0x197   : > { %s1441_s18 = smov %s1227_s11  ;;  %23 = sbr.rel (!%p21_p4) target bundleno = 10 (0xa), region = 102 }
 0x19c   :  { %639 = vsyncpa [#allocation3], 1 }
 0x19d   :  { %641 = vsyncpa [#allocation3 + $0x1], 1 }
 0x19e   :  { %642 = vsyncpa [#allocation6], 1 }
 0x19f   :  { %644 = vsyncpa [#allocation6 + $0x1], 1 }
 0x1a0   :  { %645 = vsyncpa [#allocation9], 1 }
 0x1a1   :  { %646 = vsyncpa [#allocation4], 1 }
 0x1a2   :  { %648 = vsyncpa [#allocation4 + $0x1], 1 }

</bundles_post_ra>
